<compile_context>
chip_gen: v7x
topology: tpu7x:2x2x1
jax: 0.10.0
libtpu: 0.0.40
codegen_flags: <defaults>
</compile_context>

<pallas_src>
import math

import jax
import jax.numpy as jnp
from jax.experimental import pallas as pl
from jax.experimental.pallas import tpu as pltpu


def _make_arc_kernel(*, s, cos_m, sin_m, tn, with_label):
    def kernel(*refs):
        if with_label:
            x_ref, w_ref, ix_ref, iw_ref, lbl_ref, o_ref = refs
        else:
            x_ref, w_ref, ix_ref, iw_ref, o_ref = refs

        # Read every grid index ONCE at the top level of the kernel body.
        # (Calling pl.program_id inside a pl.when branch leaves a program_id
        # primitive inside the cond jaxpr, which interpret-mode lowering
        # cannot handle -- this was the previous compile failure.)
        j = pl.program_id(1)            # class-tile index
        k = pl.program_id(2)            # reduction-step index
        nk = pl.num_programs(2)

        @pl.when(k == 0)
        def _init():
            o_ref[...] = jnp.zeros_like(o_ref)

        # bf16 MXU partial product, f32 accumulation directly into the
        # (k-resident) output block.  W is in native (N, K) layout, so
        # contract the last dim of both operands.
        o_ref[...] += jax.lax.dot_general(
            x_ref[...], w_ref[...],
            dimension_numbers=(((1,), (1,)), ((), ())),
            preferred_element_type=jnp.float32)

        @pl.when(k == nk - 1)
        def _epilogue():
            # Both norms were precomputed in the wrapper: (tm,1) and (1,tn).
            cos = o_ref[...] * ix_ref[...] * iw_ref[...]
            if with_label:
                # clamp guards sqrt against cos^2 > 1 by ulps (avoids NaN)
                sin = jnp.sqrt(jnp.maximum(1.0 - cos * cos, 0.0))
                phi = cos * cos_m - sin * sin_m
                col = jax.lax.broadcasted_iota(jnp.int32, cos.shape, 1) + j * tn
                one_hot = col == lbl_ref[...]               # (tm, tn) bool
                cos = jnp.where(one_hot, phi, cos) * s
            o_ref[...] = cos.astype(o_ref.dtype)

    return kernel


def _pick_tile(dim, candidates):
    for c in candidates:
        if dim % c == 0:
            return c
    return dim  # full extent is always a legal block size


def arc_margin_forward(x, weight, label=None, *, scale=30.0, margin=0.5,
                       tm=None, tn=None, tk=None):
    """Fused Pallas ArcMarginProduct forward.

    x:      (batch, in_features)
    weight: (out_features, in_features)   -- PyTorch nn.Linear layout
    label:  optional (batch,) int class ids
    """
    M, K = x.shape
    N, K2 = weight.shape
    assert K == K2, "weight / in_features mismatch"

    x32 = x.astype(jnp.float32)
    w32 = weight.astype(jnp.float32)

    # Row norms hoisted out of the kernel: one cheap pass each.  The weight
    # norm becomes a (1, tn) epilogue multiply; no normalized/transposed W
    # copy is ever materialized in HBM.
    inv_x = jax.lax.rsqrt(jnp.sum(x32 * x32, axis=1, keepdims=True))       # (M, 1)
    wsq = jnp.sum(w32 * w32, axis=1, keepdims=True)                        # (N, 1)
    inv_w = jnp.where(wsq > 0, jax.lax.rsqrt(wsq), 0.0).reshape(1, N)      # (1, N)

    # bf16 streams feed the MXU (f32 accumulation happens in-kernel).
    x_bf = x32.astype(jnp.bfloat16)
    w_bf = w32.astype(jnp.bfloat16)

    # Pad the class dimension to a multiple of 128: lane-dense stores and no
    # tn = N fallback (which could exceed the scoped VMEM limit for real
    # ArcFace class counts).  Padded rows get inv_w_norm = 0, so cos = 0 there.
    N_pad = ((N + 127) // 128) * 128
    if N_pad != N:
        w_bf = jnp.pad(w_bf, ((0, N_pad - N), (0, 0)))
        inv_w = jnp.pad(inv_w, ((0, 0), (0, N_pad - N)))

    tm = tm or _pick_tile(M, (512, 256, 128, 64, 32, 16, 8))
    tn = tn or _pick_tile(N_pad, (512, 256, 128))
    tk = tk or _pick_tile(K, (2048, 1024, 512, 256, 128))
    grid = (M // tm, N_pad // tn, K // tk)

    kernel = _make_arc_kernel(
        s=float(scale), cos_m=math.cos(margin), sin_m=math.sin(margin),
        tn=tn, with_label=label is not None)

    in_specs = [
        pl.BlockSpec((tm, tk), lambda i, j, k: (i, k)),   # x tile (bf16)
        pl.BlockSpec((tn, tk), lambda i, j, k: (j, k)),   # W tile (bf16, native layout)
        pl.BlockSpec((tm, 1), lambda i, j, k: (i, 0)),    # 1 / ||x||_row
        pl.BlockSpec((1, tn), lambda i, j, k: (0, j)),    # 1 / ||W||_row
    ]
    inputs = [x_bf, w_bf, inv_x, inv_w]
    if label is not None:
        in_specs.append(pl.BlockSpec((tm, 1), lambda i, j, k: (i, 0)))
        inputs.append(label.astype(jnp.int32).reshape(M, 1))

    grid_spec = pltpu.PrefetchScalarGridSpec(
        num_scalar_prefetch=0,
        grid=grid,
        in_specs=in_specs,
        out_specs=pl.BlockSpec((tm, tn), lambda i, j, k: (i, j)),
        # No scratch: the f32 output block itself is the accumulator.
    )

    out = pl.pallas_call(
        kernel,
        out_shape=jax.ShapeDtypeStruct((M, N_pad), jnp.float32),
        grid_spec=grid_spec,
        compiler_params=pltpu.CompilerParams(
            dimension_semantics=("parallel", "parallel", "arbitrary")),
    )(*inputs)

    return out[:, :N] if N_pad != N else out


def _reference(x, weight, label, scale, margin):
    """Pure-JAX transcription of the PyTorch forward."""
    x32 = x.astype(jnp.float32)
    w32 = weight.astype(jnp.float32)
    w_l2 = jnp.linalg.norm(w32, axis=1, keepdims=True).T
    x_l2 = jnp.linalg.norm(x32, axis=1, keepdims=True)
    cos = (x32 @ w32.T) / (x_l2 * w_l2)
    if label is not None:
        cos_m, sin_m = jnp.cos(margin), jnp.sin(margin)
        one_hot = jax.nn.one_hot(label, w32.shape[0], dtype=jnp.float32)
        sin = jnp.sqrt(jnp.maximum(1.0 - cos ** 2, 0.0))
        angle_sum = cos * cos_m - sin * sin_m
        cos = (angle_sum * one_hot + cos * (1.0 - one_hot)) * scale
    return cos


if __name__ == "__main__":
    key = jax.random.PRNGKey(0)
    kx, kw, kl = jax.random.split(key, 3)

    # Small but representative: out_features NOT a multiple of 128 so the
    # class-padding path is exercised; tk=128/tn=128 force multi-step K
    # reduction and multi-column one-hot offsets.
    batch, in_features, out_features = 16, 256, 1000
    scale, margin = 30.0, 0.5

    x = jax.random.normal(kx, (batch, in_features), dtype=jnp.float32)
    bound = math.sqrt(6.0 / (in_features + out_features))  # xavier_uniform_
    weight = jax.random.uniform(kw, (out_features, in_features),
                                dtype=jnp.float32, minval=-bound, maxval=bound)
    label = jax.random.randint(kl, (batch,), 0, out_features, dtype=jnp.int32)

    # Full ArcMargin path (label supplied).
    out = arc_margin_forward(x, weight, label, scale=scale, margin=margin,
                             tk=128, tn=128)
    jax.block_until_ready(out)
    ref = _reference(x, weight, label, scale, margin)
    assert out.shape == (batch, out_features) and out.dtype == jnp.float32
    # bf16 matmul (f32 accumulate): scaled-output error is well under this.
    assert jnp.allclose(out, ref, atol=2e-2, rtol=1e-2), \
        float(jnp.max(jnp.abs(out - ref)))

    # label=None path (plain cosine similarity, no margin / no scale).
    out_nl = arc_margin_forward(x, weight, None, scale=scale, margin=margin,
                                tk=128, tn=128)
    jax.block_until_ready(out_nl)
    ref_nl = _reference(x, weight, None, scale, margin)
    assert jnp.allclose(out_nl, ref_nl, atol=3e-3, rtol=3e-3), \
        float(jnp.max(jnp.abs(out_nl - ref_nl)))

    print("KERNEL_OK")
</pallas_src>

<mosaic_0001>
module attributes {stable_mosaic.version = 11 : i64} {
  func.func @kernel(%arg0: i32, %arg1: i32, %arg2: i32, %arg3: memref<16x128xbf16, #tpu.memory_space<vmem>>, %arg4: memref<128x128xbf16, #tpu.memory_space<vmem>>, %arg5: memref<16x1xf32, #tpu.memory_space<vmem>>, %arg6: memref<1x128xf32, #tpu.memory_space<vmem>>, %arg7: memref<16x1xi32, #tpu.memory_space<vmem>>, %arg8: memref<16x128xf32, #tpu.memory_space<vmem>>) attributes {dimension_semantics = [#tpu.dimension_semantics<parallel>, #tpu.dimension_semantics<parallel>, #tpu.dimension_semantics<arbitrary>], iteration_bounds = array<i64: 1, 8, 2>, scalar_prefetch = 0 : i64, scratch_operands = 0 : i64, tpu.core_type = #tpu.core_type<tc>, window_params = [{transform_indices = @transform_0, window_bounds = array<i64: 16, 128>}, {transform_indices = @transform_1, window_bounds = array<i64: 128, 128>}, {transform_indices = @transform_2, window_bounds = array<i64: 16, 1>}, {transform_indices = @transform_3, window_bounds = array<i64: 1, 128>}, {transform_indices = @transform_4, window_bounds = array<i64: 16, 1>}, {transform_indices = @transform_5, window_bounds = array<i64: 16, 128>}]} {
    %c0_i32 = arith.constant 0 : i32
    %0 = arith.cmpi eq, %arg2, %c0_i32 : i32
    %1 = arith.extui %0 : i1 to i32
    %c0_i32_0 = arith.constant 0 : i32
    %2 = arith.cmpi ne, %1, %c0_i32_0 : i32
    scf.if %2 {
      %cst_9 = arith.constant 0.000000e+00 : f32
      %12 = vector.broadcast %cst_9 : f32 to vector<16x128xf32>
      %c0_10 = arith.constant 0 : index
      %c0_11 = arith.constant 0 : index
      %13 = vector.load %arg8[%c0_10, %c0_11] : memref<16x128xf32, #tpu.memory_space<vmem>>, vector<16x128xf32>
      tpu.vector_store %arg8[%c0_10, %c0_11], %12 {strides = array<i32>} : memref<16x128xf32, #tpu.memory_space<vmem>>, vector<16x128xf32>,
    } else {
    }
    %c0 = arith.constant 0 : index
    %c0_1 = arith.constant 0 : index
    %3 = vector.load %arg8[%c0, %c0_1] : memref<16x128xf32, #tpu.memory_space<vmem>>, vector<16x128xf32>
    %c0_2 = arith.constant 0 : index
    %c0_3 = arith.constant 0 : index
    %4 = vector.load %arg3[%c0_2, %c0_3] : memref<16x128xbf16, #tpu.memory_space<vmem>>, vector<16x128xbf16>
    %c0_4 = arith.constant 0 : index
    %c0_5 = arith.constant 0 : index
    %5 = vector.load %arg4[%c0_4, %c0_5] : memref<128x128xbf16, #tpu.memory_space<vmem>>, vector<128x128xbf16>
    %cst = arith.constant dense<0.000000e+00> : vector<16x128xf32>
    %6 = tpu.matmul %4, %5, %cst {dimension_numbers = #tpu.dot_dimension_numbers<[1], [1], [0], [0], [0, 0, 1, 0], [], []>} : vector<16x128xbf16>, vector<128x128xbf16>, vector<16x128xf32> -> vector<16x128xf32>
    %7 = arith.addf %3, %6 : vector<16x128xf32>
    %c0_6 = arith.constant 0 : index
    %c0_7 = arith.constant 0 : index
    %8 = vector.load %arg8[%c0_6, %c0_7] : memref<16x128xf32, #tpu.memory_space<vmem>>, vector<16x128xf32>
    tpu.vector_store %arg8[%c0_6, %c0_7], %7 {strides = array<i32>} : memref<16x128xf32, #tpu.memory_space<vmem>>, vector<16x128xf32>,
    %c1_i32 = arith.constant 1 : i32
    %9 = arith.cmpi eq, %arg2, %c1_i32 : i32
    %10 = arith.extui %9 : i1 to i32
    %c0_i32_8 = arith.constant 0 : i32
    %11 = arith.cmpi ne, %10, %c0_i32_8 : i32
    scf.if %11 {
      %c0_9 = arith.constant 0 : index
      %c0_10 = arith.constant 0 : index
      %12 = vector.load %arg8[%c0_9, %c0_10] : memref<16x128xf32, #tpu.memory_space<vmem>>, vector<16x128xf32>
      %c0_11 = arith.constant 0 : index
      %c0_12 = arith.constant 0 : index
      %13 = vector.load %arg5[%c0_11, %c0_12] : memref<16x1xf32, #tpu.memory_space<vmem>>, vector<16x1xf32>
      %14 = vector.broadcast %13 : vector<16x1xf32> to vector<16x128xf32>
      %15 = arith.mulf %12, %14 : vector<16x128xf32>
      %c0_13 = arith.constant 0 : index
      %c0_14 = arith.constant 0 : index
      %16 = vector.load %arg6[%c0_13, %c0_14] : memref<1x128xf32, #tpu.memory_space<vmem>>, vector<1x128xf32>
      %17 = vector.broadcast %16 : vector<1x128xf32> to vector<16x128xf32>
      %18 = arith.mulf %15, %17 : vector<16x128xf32>
      %19 = arith.mulf %18, %18 : vector<16x128xf32>
      %cst_15 = arith.constant 1.000000e+00 : f32
      %20 = vector.broadcast %cst_15 : f32 to vector<16x128xf32>
      %21 = arith.subf %20, %19 : vector<16x128xf32>
      %cst_16 = arith.constant 0.000000e+00 : f32
      %22 = vector.broadcast %cst_16 : f32 to vector<16x128xf32>
      %23 = arith.maximumf %21, %22 : vector<16x128xf32>
      %24 = math.sqrt %23 : vector<16x128xf32>
      %cst_17 = arith.constant 0.87758255 : f32
      %25 = vector.broadcast %cst_17 : f32 to vector<16x128xf32>
      %26 = arith.mulf %18, %25 : vector<16x128xf32>
      %cst_18 = arith.constant 0.47942555 : f32
      %27 = vector.broadcast %cst_18 : f32 to vector<16x128xf32>
      %28 = arith.mulf %24, %27 : vector<16x128xf32>
      %29 = arith.subf %26, %28 : vector<16x128xf32>
      %30 = tpu.iota {dimensions = array<i32: 1>} : vector<16x128xi32>
      %c128_i32 = arith.constant 128 : i32
      %31 = arith.muli %arg1, %c128_i32 : i32
      %32 = vector.broadcast %31 : i32 to vector<16x128xi32>
      %33 = arith.addi %30, %32 : vector<16x128xi32>
      %c0_19 = arith.constant 0 : index
      %c0_20 = arith.constant 0 : index
      %34 = vector.load %arg7[%c0_19, %c0_20] : memref<16x1xi32, #tpu.memory_space<vmem>>, vector<16x1xi32>
      %35 = vector.broadcast %34 : vector<16x1xi32> to vector<16x128xi32>
      %36 = arith.cmpi eq, %33, %35 : vector<16x128xi32>
      %37 = arith.select %36, %29, %18 : vector<16x128xi1>, vector<16x128xf32>
      %cst_21 = arith.constant 3.000000e+01 : f32
      %38 = vector.broadcast %cst_21 : f32 to vector<16x128xf32>
      %39 = arith.mulf %37, %38 : vector<16x128xf32>
      %c0_22 = arith.constant 0 : index
      %c0_23 = arith.constant 0 : index
      %40 = vector.load %arg8[%c0_22, %c0_23] : memref<16x128xf32, #tpu.memory_space<vmem>>, vector<16x128xf32>
      tpu.vector_store %arg8[%c0_22, %c0_23], %39 {strides = array<i32>} : memref<16x128xf32, #tpu.memory_space<vmem>>, vector<16x128xf32>,
    } else {
    }
    return
  }
  func.func @transform_0(%arg0: i32, %arg1: i32, %arg2: i32) -> (i32, i32) {
    %c0_i32 = arith.constant 0 : i32
    return %arg0, %arg2 : i32, i32
  }
  func.func @transform_1(%arg0: i32, %arg1: i32, %arg2: i32) -> (i32, i32) {
    %c0_i32 = arith.constant 0 : i32
    return %arg1, %arg2 : i32, i32
  }
  func.func @transform_2(%arg0: i32, %arg1: i32, %arg2: i32) -> (i32, i32) {
    %c0_i32 = arith.constant 0 : i32
    %c0_i32_0 = arith.constant 0 : i32
    return %arg0, %c0_i32 : i32, i32
  }
  func.func @transform_3(%arg0: i32, %arg1: i32, %arg2: i32) -> (i32, i32) {
    %c0_i32 = arith.constant 0 : i32
    %c0_i32_0 = arith.constant 0 : i32
    return %c0_i32, %arg1 : i32, i32
  }
  func.func @transform_4(%arg0: i32, %arg1: i32, %arg2: i32) -> (i32, i32) {
    %c0_i32 = arith.constant 0 : i32
    %c0_i32_0 = arith.constant 0 : i32
    return %arg0, %c0_i32 : i32, i32
  }
  func.func @transform_5(%arg0: i32, %arg1: i32, %arg2: i32) -> (i32, i32) {
    %c0_i32 = arith.constant 0 : i32
    return %arg0, %arg1 : i32, i32
  }
}

</mosaic_0001>

<bundles_post_ra>
// kernel: tpu_custom_call.1
= control target key start
LH: loop header
LB: loop body
LE: loop exit
PB: predicated region body
PF: predicated region fallthrough
CT: control target
= control target key end

     0   :  { %s1497_s0 = inlined_call_operand.vmem [shape: bf16[16,256], index: 0, kind: input, shape index: {}]   ;;  %s1498_s1 = inlined_call_operand.hbm [shape: bf16[1024,256], index: 1, kind: input, shape index: {}]   ;;  %s1499_s2 = inlined_call_operand.vmem [shape: f32[16,1], index: 2, kind: input, shape index: {}]   ;;  %s1500_s3 = inlined_call_operand.vmem [shape: f32[1,1024], index: 3, kind: input, shape index: {}]   ;;  %s1501_s4 = inlined_call_operand.vmem [shape: s32[16,1], index: 4, kind: input, shape index: {}]   ;;  %s1502_s5 = inlined_call_operand.hbm [shape: f32[16,1024], index: 5, kind: output, shape index: {}]  }
   0x1   :  { %1511 = sst [smem:[#allocation18_spill]] %s1502_s5 }
   0x2   :  { %10 = vsyncpa [#allocation4], 0 }
   0x3   :  { %12 = vsyncpa [#allocation4 + $0x1], 0 }
   0x4   :  { %13 = vsyncpa [#allocation5], 0 }
   0x5   :  { %15 = vsyncpa [#allocation5 + $0x1], 0  ;;  %s1178_s18 = smov 0   ;;  %s1180_s19 = smov 0  }
   0x6   :  { %s1182_s20 = smov 0   ;;  %s1184_s21 = smov 0  }
   0x7   :  { %s1186_s22 = smov 0   ;;  %s1188_s23 = smov 0  }
   0x8   :  { %s1190_s24 = smov 0   ;;  %s1192_s25 = smov 0  }
   0x9   :  { %s1194_s26 = smov 0   ;;  %s1196_s27 = smov 0  }
   0xa   :  { %s1198_s28 = smov 0   ;;  %s1200_s29 = smov 0  }
   0xb   :  { %s1202_s30 = smov 0  }
   0xc LB: > { %1512 = sst [smem:[#allocation9_spill]] %s1086_s18  ;;  %s767_s6 = sadd.s32 4294967295, %s1134_s30   ;;  %s1134_s30 = sphi %s1202_s30, %s21_s30   ;;  %s1130_s29 = sphi %s1200_s29, %s1548_s29   ;;  %s1126_s28 = sphi %s1198_s28, %s1547_s28   ;;  %s1122_s27 = sphi %s1196_s27, %s1546_s27   ;;  %s1118_s26 = sphi %s1194_s26, %s1545_s26   ;;  %s1114_s25 = sphi %s1192_s25, %s1537_s25   ;;  %s1110_s24 = sphi %s1190_s24, %s1536_s24   ;;  %s1106_s23 = sphi %s1188_s23, %s1544_s23   ;;  %s1102_s22 = sphi %s1186_s22, %s1543_s22   ;;  %s1098_s21 = sphi %s1184_s21, %s1542_s21   ;;  %s1094_s20 = sphi %s1182_s20, %s1534_s20   ;;  %s1090_s19 = sphi %s1180_s19, %s1541_s19   ;;  %s1086_s18 = sphi %s1178_s18, %s1540_s18  }
   0xd   : > { %1513 = sst [smem:[#allocation10_spill]] %s1094_s20  ;;  %s33_s8 = sadd.s32 1, %s1126_s28 }
   0xe   : > { %1514 = sst [smem:[#allocation11_spill]] %s1114_s25  ;;  %s36_s9 = sadd.s32 1, %s1130_s29 }
   0xf   : > { %p34_p0 = scmp.ge.s32.totalorder %s33_s8, 2  ;;  %s49_s10 = sadd.s32 1, %s1114_s25 }
  0x10   : > { %p56_p1 = scmp.ne.s32.totalorder %s1114_s25, %s1110_s24  ;;  %p57_p2 = scmp.eq.s32.totalorder %s1134_s30, 0 }
  0x11   : > { %s1550_s8 = smov (%p34_p0, %s33_s8), 0  ;;  %s1552_s9 = smov (!%p34_p0, %s36_s9), %s1130_s29 }
  0x12   : > { %1515 = sst [smem:[#allocation12_spill]] %s1550_s8  ;;  %s45_s11 = ssub.s32 %s1126_s28, %s1550_s8 }
  0x13   : > { %p1256_p3 = por %p57_p2, %p56_p1  ;;  %p38_p4 = scmp.ge.s32.totalorder %s1552_s9, 8 }
  0x14   : > { %p47_p5 = scmp.eq.s32.totalorder %s45_s11, 0  ;;  %s77_s13 = sadd.s32 1, %s1106_s23 }
  0x15   : > { %p84_p6 = scmp.ne.s32.totalorder %s1106_s23, %s1102_s22  ;;  %s1554_s9 = smov (%p38_p4, %s1552_s9), 0 }
  0x16   : > { %1517 = sst [smem:[#allocation13_spill]] %s1554_s9  ;;  %s72_s15 = ssub.s32 %s1130_s29, %s1554_s9 }
  0x17   : > { %s1266_s14 = scalar_select %p47_p5, %s1114_s25, %s49_s10  }
  0x18   : > { %p1270_p7 = por %p84_p6, %p57_p2  ;;  %s74_s17 = sor.u32 %s72_s15, %s45_s11 }
  0x19   : > { %1518 = sst [smem:[#allocation14_spill]] %s1266_s14  ;;  %p90_p8 = scmp.ne.s32.totalorder %s1102_s22, %s1098_s21 }
  0x1a   : > { %p75_p9 = scmp.eq.s32.totalorder %s74_s17, 0  ;;  %p91_p10 = scmp.eq.s32.totalorder %s767_s6, 0 }
  0x1b   : > { %p181_p11 = scmp.eq.s32.totalorder %s72_s15, 0  ;;  %s183_s7 = sadd.s32 1, %s1094_s20 }
  0x1c   : > { %s1280_s8 = scalar_select %p75_p9, %s1106_s23, %s77_s13  }
  0x1d   : > { %p1282_p12 = por %p91_p10, %p90_p8  ;;  %p193_p13 = scmp.ne.s32.totalorder %s1094_s20, %s1090_s19 }
  0x1e   : > { %1520 = sst [smem:[#allocation15_spill]] %s1280_s8  ;;  %p194_p0 = scmp.eq.s32.totalorder %s767_s6, 15 }
  0x1f   : > { %s1289_s10 = scalar_select %p181_p11, %s1094_s20, %s183_s7  }
  0x20   : > { %p199_p1 = scmp.ne.s32.totalorder %s1090_s19, %s1086_s18  ;;  %s1523_s9 = sadd.s32 4294967294, %s1134_s30  }
  0x21   : > { %1522 = sst [smem:[#allocation16_spill]] %s1289_s10  ;;  %p200_p2 = scmp.eq.s32.totalorder %s1523_s9, 15 }
  0x22   : > { %p1297_p4 = por %p194_p0, %p193_p13  ;;  %p772_p6 = scmp.ge.s32.totalorder %s1134_s30, 16 }
  0x23   : > { %p1301_p5 = por %p200_p2, %p199_p1 }
  0x24   : > { %s1524_s21 = scalar_select %p1297_p4, 1, 0 }
  0x25   : > { %s1525_s11 = scalar_select %p1301_p5, 1, 0 }
  0x26   : > { %234 = sbr.rel (%p772_p6) target bundleno = 80 (0x50), region = 24 }
  0x27   : > { %1526 = sst [smem:[#allocation17_spill]] %s1525_s11 }
  0x2d   : > { %237 = sbr.rel (!%p1256_p3) target bundleno = 52 (0x34), region = 28  ;;  %s239_s6 = sand.u32 (%p1256_p3), 1, %s1114_s25  }
  0x2e   : > { %s774_s7 = sshll.u32 (%p1256_p3), %s1126_s28, 2  ;;  %s773_s13 = sshll.u32 (%p1256_p3), %s239_s6, 3 }
  0x2f   : > { %s246_s17 = scalar_lea.vmem (%p1256_p3), %s1497_s0, %s774_s7  ;;  %s241_s14 = scalar_lea.vmem (%p1256_p3), [#allocation2], %s773_s13 }
  0x30   : > { %v262_v0 = vld [vmem:[%s246_s17] sm:$0xf] (%p1256_p3)  ;;  %v264_v1 = vld [vmem:[%s246_s17 + $0x8] sm:$0xf] (%p1256_p3) }
  0x31   : > { %263 = vst [vmem:[%s241_s14] sm:$0xf] (%p1256_p3), %v262_v0  ;;  %265 = vst [vmem:[%s241_s14 + $0x4] sm:$0xf] (%p1256_p3), %v264_v1 }
  0x34 PF: > { %s293_s12 = sand.u32 1, %s1106_s23   ;;  %s800_s8 = sshll.u32 %s1130_s29, 5 }
  0x35   : > { %s775_s10 = sshll.u32 %s293_s12, 6  ;;  %s303_s25 = sadd.s32 %s1126_s28, %s800_s8 }
  0x36   : > { %s778_s20 = sshll.u32 %s303_s25, 6  ;;  %s297_s6 = scalar_lea.vmem [#allocation3], %s775_s10 }
  0x37   : > { %s306_s11 = sshll.u32 %s297_s6, 4  ;;  %s1319_s7 = scalar_lea.hbm %s1498_s1, %s778_s20  ;;  %s1321_s11 = int_to_ptr.vmem [resolvable:$true] %s306_s11 }
  0x38   : > { %s1323_s14 = scalar_lea.sflag [#allocation4], %s293_s12  ;;  %s968_s13 = scalar_lea.hbm %s1319_s7, 1024 }
  0x39   : > { %p969_p3 = scmp.ne.s32.totalorder %s1319_s7, %s968_s13  ;;  %s972_s10 = scalar_lea.hbm %s1498_s1, 16384 }
  0x3a   : > { %p973_p10 = scmp.lt.u32.totalorder %s1319_s7, %s1498_s1  ;;  %p974_p11 = scmp.lt.u32.totalorder %s972_s10, %s968_s13 }
  0x3b   : > { %p970_p8 = pnand %p969_p3, %p1270_p7  ;;  %p976_p0 = scmp.lt.u32.totalorder %s968_s13, %s1319_s7 }
  0x3c   : > { %p975_p13 = por %p974_p11, %p973_p10 }
  0x3d   : > { %p971_p9 = pneg %p970_p8 }
  0x3e   : > { %p977_p1 = por %p976_p0, %p975_p13 }
  0x40   : > { %p978_p2 = pnand %p977_p1, %p971_p9 }
  0x42   : > { %981 = shalt.err (!%p978_p2)
}
  0x43   : > { %s982_s15 = scalar_lea.vmem %s1321_s11, 1024  ;;  %s1136_s17 = smov [#allocation3]  }
  0x44   : > { %p983_p6 = scmp.ne.s32.totalorder %s1321_s11, %s982_s15  ;;  %s986_s12 = sshll.u32 %s1136_s17, 4  ;;  %s987_s12 = int_to_ptr.vmem [resolvable:$false] %s986_s12 }
  0x45   : > { %s988_s6 = scalar_lea.vmem %s987_s12, 2048  ;;  %p989_p5 = scmp.lt.s32.totalorder %s1321_s11, %s987_s12 }
  0x46   : > { %p984_p3 = pnand %p983_p6, %p1270_p7  ;;  %p990_p4 = scmp.lt.s32.totalorder %s988_s6, %s982_s15 }
  0x48   : > { %p985_p8 = pneg %p984_p3  ;;  %p991_p10 = por %p990_p4, %p989_p5 }
  0x4a   : > { %p992_p11 = pnand %p991_p10, %p985_p8 }
  0x4c   : > { %995 = shalt.err (!%p992_p11)
}
  0x4d   : > { %s1137_s9 = smov 128   ;;  %s1138_s13 = smov 64  }
  0x4e   : > { %s1139_s25 = smov 4  }
  0x4f   : > { %830 = dma.hbm_to_vmem [thread:$0]  (%p1270_p7), %s1319_s7, 1024, %s1321_s11, %s1323_s14, %s1137_s9, %s1138_s13, %s1139_s25  }
  0x50 PF: > { %p779_p9 = scmp.ge.s32.totalorder %s1134_s30, 1  ;;  %p320_p13 = scmp.lt.s32.totalorder %s1134_s30, 17 }
  0x52   : > { %p321_p0 = pnand %p779_p9, %p320_p13 }
  0x53   : > { %s327_s8 = sand.u32 (!%p321_p0), 1, %s1110_s24   ;;  %s333_s10 = sand.u32 (!%p321_p0), 1, %s1102_s22  }
  0x54   : > { %324 = sbr.rel (%p321_p0) target bundleno = 452 (0x1c4), region = 77  ;;  %s1351_s18 = sshll.u32 (!%p321_p0), %s327_s8, 3 }
  0x55   : > { %s781_s20 = sshll.u32 (!%p321_p0), %s333_s10, 6  ;;  %s329_s15 = scalar_lea.vmem (!%p321_p0), [#allocation2], %s1351_s18 }
  0x56   : > { %s334_s17 = scalar_lea.sflag (!%p321_p0), [#allocation4], %s333_s10  ;;  %s1354_s16 = scalar_lea.vmem (!%p321_p0), [#allocation3], %s781_s20 }
  0x5b   : > { %1077 = dma.done.wait (%p1282_p12), %s334_s17, 1024  }
  0x5c   : > { %1079 = vsyncadd (%p1282_p12), %s334_s17, 4294966272  ;;  %s378_s11 = sand.u32 1, %s1090_s19   ;;  %p389_p7 = scmp.lt.s32.totalorder %s1122_s27, 7 }
  0x5d   : > { %s782_s24 = sshll.u32 %s378_s11, 4  ;;  %p783_p4 = scmp.ne.s32.totalorder %s1118_s26, 0 }
  0x5e   : > { %s1365_s7 = scalar_select %p389_p7, %s1122_s27, 7 }
  0x5f   : > { %s1371_s9 = scalar_lea.vmem [#allocation6], %s782_s24  ;;  %403 = sbr.rel (%p783_p4) target bundleno = 102 (0x66), region = 89  ;;  %v1140_v2 = vmov (!%p783_p4), 0.0  }
  0x60   : > { %s391_s6 = scalar_lea.vmem %s1500_s3, %s1365_s7  ;;  %404 = vst [vmem:[%s1371_s9] sm:$0xff] (!%p783_p4), %v1140_v2  ;;  %405 = vst [vmem:[%s1371_s9 + $0x8] sm:$0xff] (!%p783_p4), %v1140_v2 }
  0x66 PF: > { %v953_v3 = vld [vmem:[%s1354_s16] sm:$0xff]   ;;  %v1141_v4 = vmov 0.0   ;;  %vm1142_vm0 = vmmov 0   ;;  %v954_v5 = vld [vmem:[%s1354_s16 + $0x8] sm:$0xff]   ;;  %v955_v6 = vld [vmem:[%s1354_s16 + $0x10] sm:$0xff]   ;;  %p793_p12 = scmp.ne.s32.totalorder %s1118_s26, 1 }
  0x67   : > { %810 = vmatprep.subr.bf16.mxu0 %v1141_v4  ;;  %826 = vmatprep.mubr.msk.bf16.mxu0 %vm1142_vm0, %v1141_v4  ;;  %v956_v7 = vld [vmem:[%s1354_s16 + $0x18] sm:$0xff]   ;;  %v957_v8 = vld [vmem:[%s1354_s16 + $0x20] sm:$0xff]   ;;  %v958_v9 = vld [vmem:[%s1354_s16 + $0x28] sm:$0xff]   ;;  %v1143_v23 = vmov (!%p793_p12), 0   ;;  %v580_v41 = vlaneseq (!%p793_p12) }
  0x68   : > { %811 = vmatpush3.bf16.xpose.msra.mxu0 %v953_v3  ;;  %v959_v10 = vld [vmem:[%s1354_s16 + $0x30] sm:$0xff]   ;;  %v960_v11 = vld [vmem:[%s1354_s16 + $0x38] sm:$0xff]   ;;  %962 = vset.pattern.permute.xlu0 (!%p793_p12), %v1143_v23  ;;  %s795_s16 = sshll.u32 (!%p793_p12), %s1122_s27, 7 }
  0x69   : > { %812 = vmatprep.subr.bf16.mxu0 %v1141_v4  ;;  %v961_v12 = vld [vmem:[%s329_s15] sm:$0xff]   ;;  %v406_v13 = vld [vmem:[%s1371_s9] sm:$0xff]  ;;  %963 = vset.pattern.permute.xlu1 (!%p793_p12), %v1143_v23  ;;  %v581_v42 = vand.u32 (!%p793_p12), 127, %v580_v41  ;;  %v583_v43 = vstv (!%p793_p12), %s795_s16 }
  0x6a   : > { %v407_v15 = vld [vmem:[%s1371_s9 + $0x8] sm:$0xff]  ;;  %v531_v21 = vld [vmem:[%s1499_s2] sm:$0xff] (!%p793_p12) }
  0x6b   : > { %v585_v22 = vld [vmem:[%s1501_s4] sm:$0xff] (!%p793_p12)  ;;  %535 = vperm.xlu0 (!%p793_p12), %962, %v531_v21   ;;  %v532_v24 = vld [vmem:[%s1499_s2 + $0x8] sm:$0xff] (!%p793_p12)  ;;  %v584_v46 = vadd.s32 (!%p793_p12), %v583_v43, %v581_v42 }
  0x6c   : > { %588 = vperm.xlu1 (!%p793_p12), %963, %v585_v22   ;;  %v586_v25 = vld [vmem:[%s1501_s4 + $0x8] sm:$0xff] (!%p793_p12)  ;;  %v794_v27 = vld [vmem:[%s391_s6] ss:$0 sm:$0xff] (!%p793_p12) }
  0x6f   : > { %540 = vperm.xlu0 (!%p793_p12), %962, %v532_v24  }
  0x70   : > { %813 = vmatpush3.bf16.xpose.msra.mxu0 %v954_v5  ;;  %591 = vperm.xlu1 (!%p793_p12), %963, %v586_v25  }
  0x71   : > { %814 = vmatprep.subr.bf16.mxu0 %v1141_v4 }
  0x78   : > { %815 = vmatpush3.bf16.xpose.msra.mxu0 %v955_v6 }
  0x79   : > { %816 = vmatprep.subr.bf16.mxu0 %v1141_v4 }
  0x80   : > { %817 = vmatpush3.bf16.xpose.msra.mxu0 %v956_v7 }
  0x81   : > { %818 = vmatprep.subr.bf16.mxu0 %v1141_v4 }
  0x88   : > { %819 = vmatpush3.bf16.xpose.msra.mxu0 %v957_v8 }
  0x89   : > { %820 = vmatprep.subr.bf16.mxu0 %v1141_v4 }
  0x90   : > { %821 = vmatpush3.bf16.xpose.msra.mxu0 %v958_v9 }
  0x91   : > { %822 = vmatprep.subr.bf16.mxu0 %v1141_v4 }
  0x98   : > { %823 = vmatpush3.bf16.xpose.msra.mxu0 %v959_v10 }
  0x99   : > { %824 = vmatprep.subr.bf16.mxu0 %v1141_v4 }
  0xa0   : > { %825 = vmatpush3.bf16.xpose.msra.mxu0 %v960_v11 }
  0xa7   : > { %827 = vmatmul.mubr.bf16.vlgmr.msra.gmra.mrb[0].mxu0 %v961_v12 }
  0xea   : > { %v536_v28 = vpop.permute.xlu0 (!%p793_p12), %535 }
  0xeb   : > { %v589_v48 = vpop.permute.xlu1 (!%p793_p12), %588 }
  0xec   : > { %vm593_vm3 = vcmp.eq.s32.totalorder (!%p793_p12), %v584_v46, %v589_v48 }
  0xee   : > { %v541_v32 = vpop.permute.xlu0 (!%p793_p12), %540 }
  0xef   : > { %v592_v61 = vpop.permute.xlu1 (!%p793_p12), %591 }
  0xf0   : > { %vm594_vm6 = vcmp.eq.s32.totalorder (!%p793_p12), %v584_v46, %v592_v61 }
 0x179   : > { %528 = sbr.rel (%p793_p12) target bundleno = 424 (0x1a8), region = 93 }
 0x17a   : > { %v514_v14 = vpop.f32.mrb[0].mxu0 }
 0x17b   : > { %v521_v16 = vadd.f32 %v514_v14, %v406_v13  ;;  %v828_v17 = vpop.f32.mrb[1].mxu0 }
 0x17c   : > { %v517_v18 = vpop.f32.mrb[2].mxu0 }
 0x17d   : > { %523 = vst [vmem:[%s1371_s9] sm:$0xff] %v521_v16  ;;  %v522_v19 = vadd.f32 %v517_v18, %v407_v15  ;;  %v829_v20 = vpop.f32.mrb[3].mxu0 }
 0x17f   : > { %524 = vst [vmem:[%s1371_s9 + $0x8] sm:$0xff] %v522_v19 }
 0x184   : > { %v529_v26 = vld [vmem:[%s1371_s9] sm:$0xff] }
 0x185   : > { %v543_v29 = vmul.f32 %v536_v28, %v529_v26 }
 0x186   : > { %v530_v30 = vld [vmem:[%s1371_s9 + $0x8] sm:$0xff] }
 0x187   : > { %v552_v31 = vmul.f32 %v794_v27, %v543_v29  ;;  %v544_v34 = vmul.f32 %v541_v32, %v530_v30 }
 0x189   : > { %v554_v33 = vmul.f32 %v552_v31, %v552_v31  ;;  %v553_v36 = vmul.f32 %v794_v27, %v544_v34  ;;  %v574_v52 = vmul.f32 0.87758255, %v552_v31 }
 0x18b   : > { %v556_v35 = vsub.f32 1.0, %v554_v33  ;;  %v555_v38 = vmul.f32 %v553_v36, %v553_v36  ;;  %v575_v59 = vmul.f32 0.87758255, %v553_v36 }
 0x18d   : > { %v558_v37 = vmax.f32 %v556_v35, 0.0  ;;  %v557_v39 = vsub.f32 1.0, %v555_v38 }
 0x18f   : > { %964 = vrsqrt.f32 %v558_v37  ;;  %v559_v40 = vmax.f32 %v557_v39, 0.0  ;;  %vm562_vm1 = vcmp.eq.f32.partialorder %v558_v37, inf  ;;  %v565_v47 = vand.u32 2147483648, %v558_v37 }
 0x190   : > { %vm564_vm2 = vcmp.eq.f32.partialorder %v558_v37, 0.0 }
 0x191   : > { %966 = vrsqrt.f32 %v559_v40  ;;  %vm569_vm4 = vcmp.eq.f32.partialorder %v559_v40, inf  ;;  %v572_v55 = vand.u32 2147483648, %v559_v40  ;;  %vm571_vm5 = vcmp.eq.f32.partialorder %v559_v40, 0.0 }
 0x199   : > { %v965_v44 = vpop.eup %964 }
 0x19a   : > { %v561_v45 = vmul.f32 %v965_v44, %v558_v37 }
 0x19b   : > { %v967_v50 = vpop.eup %966 }
 0x19c   : > { %v563_v49 = vsel %vm562_vm1, %v558_v37, %v561_v45  ;;  %v568_v54 = vmul.f32 %v967_v50, %v559_v40 }
 0x19d   : > { %v566_v51 = vsel %vm564_vm2, %v565_v47, %v563_v49 }
 0x19e   : > { %v576_v53 = vmul.f32 0.47942555, %v566_v51  ;;  %v570_v57 = vsel %vm569_vm4, %v559_v40, %v568_v54 }
 0x19f   : > { %v573_v58 = vsel %vm571_vm5, %v572_v55, %v570_v57 }
 0x1a0   : > { %v578_v56 = vsub.f32 %v574_v52, %v576_v53  ;;  %v577_v62 = vmul.f32 0.47942555, %v573_v58 }
 0x1a2   : > { %v595_v60 = vsel %vm593_vm3, %v578_v56, %v552_v31  ;;  %v579_v0 = vsub.f32 %v575_v59, %v577_v62 }
 0x1a3   : > { %v597_v63 = vmul.f32 30.0, %v595_v60 }
 0x1a4   : > { %v596_v1 = vsel %vm594_vm6, %v579_v0, %v553_v36 }
 0x1a5   : > { %599 = vst [vmem:[%s1371_s9] sm:$0xff] %v597_v63  ;;  %v598_v2 = vmul.f32 30.0, %v596_v1 }
 0x1a7   : > { %600 = vst [vmem:[%s1371_s9 + $0x8] sm:$0xff] %v598_v2 }
 0x1a8 PF: > { %s797_s24 = sshll.u32 %s1122_s27, 7  ;;  %s1527_s12 = sld [smem:[#allocation18_spill]] }
 0x1a9   : > { %s617_s5 = sshll.u32 %s1371_s9, 4  ;;  %s1424_s13 = scalar_lea.sflag [#allocation5], %s378_s11  ;;  %s1420_s5 = int_to_ptr.vmem [resolvable:$true] %s617_s5 }
 0x1aa   : > { %s996_s25 = scalar_lea.vmem %s1420_s5, 256  ;;  %p1528_p1 = scmp.ne.s32.totalorder %s1524_s21, 0 }
 0x1ab   : > { %p997_p5 = scmp.ne.s32.totalorder %s1420_s5, %s996_s25  ;;  %s1144_s27 = smov [#allocation6]  }
 0x1ac   : > { %s1000_s8 = sshll.u32 %s1144_s27, 4  ;;  %s1001_s8 = int_to_ptr.vmem [resolvable:$false] %s1000_s8 }
 0x1ad   : > { %p998_p2 = pnand %p997_p5, %p1528_p1  ;;  %s1002_s10 = scalar_lea.vmem %s1001_s8, 512 }
 0x1ae   : > { %s1417_s6 = scalar_lea.hbm %s1527_s12, %s797_s24  ;;  %p1003_p3 = scmp.lt.s32.totalorder %s1420_s5, %s1001_s8 }
 0x1af   : > { %p999_p6 = pneg %p998_p2  ;;  %p1004_p8 = scmp.lt.s32.totalorder %s1002_s10, %s996_s25 }
 0x1b1   : > { %p1005_p10 = por %p1004_p8, %p1003_p3 }
 0x1b3   : > { %p1006_p11 = pnand %p1005_p10, %p999_p6 }
 0x1b5   : > { %1009 = shalt.err (!%p1006_p11)
}
 0x1b6   : > { %s1010_s11 = scalar_lea.hbm %s1417_s6, 256  ;;  %s1014_s26 = scalar_lea.hbm %s1527_s12, 2048 }
 0x1b7   : > { %p1011_p9 = scmp.ne.s32.totalorder %s1417_s6, %s1010_s11  ;;  %p1015_p7 = scmp.lt.u32.totalorder %s1417_s6, %s1527_s12 }
 0x1b8   : > { %p1016_p4 = scmp.lt.u32.totalorder %s1014_s26, %s1010_s11  ;;  %p1018_p5 = scmp.lt.u32.totalorder %s1010_s11, %s1417_s6 }
 0x1b9   : > { %p1012_p13 = pnand %p1011_p9, %p1528_p1 }
 0x1ba   : > { %p1017_p12 = por %p1016_p4, %p1015_p7 }
 0x1bb   : > { %p1013_p0 = pneg %p1012_p13 }
 0x1bc   : > { %p1019_p2 = por %p1018_p5, %p1017_p12 }
 0x1be   : > { %p1020_p6 = pnand %p1019_p2, %p1013_p0 }
 0x1c0   : > { %1023 = shalt.err (!%p1020_p6)
}
 0x1c1   : > { %s1145_s17 = smov 128   ;;  %s1146_s16 = smov 1024  }
 0x1c2   : > { %s1147_s24 = smov 8  }
 0x1c3   : > { %832 = dma.vmem_to_hbm [thread:$0]  (%p1528_p1), %s1420_s5, 256, %s1417_s6, %s1424_s13, %s1145_s17, %s1146_s16, %s1147_s24  }
 0x1c4 PF: > { %s1529_s7 = sld [smem:[#allocation9_spill]]  ;;  %s1530_s14 = sld [smem:[#allocation17_spill]] }
 0x1c5   : > { %p838_p3 = scmp.ge.s32.totalorder %s1134_s30, 2 }
 0x1ca   : > { %s632_s25 = sand.u32 1, %s1529_s7   ;;  %p1531_p8 = scmp.ne.s32.totalorder %s1530_s14, 0 }
 0x1cb   : > { %s633_s27 = scalar_lea.sflag [#allocation5], %s632_s25 }
 0x1cc   : > { %p835_p10 = pnand %p838_p3, %p1531_p8 }
 0x1ce   : > { %1081 = dma.done.wait (!%p835_p10), %s633_s27, 256  }
 0x1cf   : > { %1083 = vsyncadd (!%p835_p10), %s633_s27, 4294967040  ;;  %s21_s30 = sadd.s32 1, %s1134_s30   ;;  %s1533_s21 = sld [smem:[#allocation10_spill]] }
 0x1d0   : > { %p1453_p11 = scmp.ge.s32.totalorder %s21_s30, 18   ;;  %s1534_s20 = sld [smem:[#allocation16_spill]] }
 0x1d1   : > { %s1535_s6 = sld [smem:[#allocation15_spill]]  ;;  %s1536_s24 = sld [smem:[#allocation11_spill]] }
 0x1d2   : > { %s1537_s25 = sld [smem:[#allocation14_spill]]  ;;  %s1538_s5 = sld [smem:[#allocation12_spill]] }
 0x1d3   : > { %s1539_s13 = sld [smem:[#allocation13_spill]]  ;;  %s1540_s18 = smov %s1090_s19 }
 0x1d4   : > { %s1545_s26 = smov %s1126_s28  ;;  %s1546_s27 = smov %s1130_s29 }
 0x1d5   : > { %s1541_s19 = smov %s1533_s21  ;;  %s1542_s21 = smov %s1102_s22 }
 0x1d6   : > { %s1543_s22 = smov %s1106_s23  ;;  %20 = sbr.rel (!%p1453_p11) target bundleno = 12 (0xc), region = 151 }
 0x1d7   : > { %s1544_s23 = smov %s1535_s6 }
 0x1d8   : > { %s1547_s28 = smov %s1538_s5 }
 0x1d9   : > { %s1548_s29 = smov %s1539_s13 }
 0x1dd   :  { %638 = vsyncpa [#allocation4], 1 }
 0x1de   :  { %640 = vsyncpa [#allocation4 + $0x1], 1 }
 0x1df   :  { %641 = vsyncpa [#allocation5], 1 }
 0x1e0   :  { %643 = vsyncpa [#allocation5 + $0x1], 1 }

</bundles_post_ra>
